<compile_context>
chip_gen: v5e
topology: v5e:2x2
jax: 0.10.0
libtpu: 0.0.40
codegen_flags: <defaults>
</compile_context>

<pallas_src>
import jax
import jax.numpy as jnp
from jax.experimental import pallas as pl
from jax.experimental.pallas import tpu as pltpu


def _round_up(x: int, m: int) -> int:
    return ((x + m - 1) // m) * m


def _make_penalty_kernel(C: int, num_t: int):
    """Penalty over one (C, TILE_R, 128) gradient block of one (batch, split)."""

    def kernel(g_ref, out_ref, acc_ref):
        t = pl.program_id(2)

        # Per-channel upcast + multiply-accumulate on dense (TILE_R, 128)
        # tiles: channels sit on the leading non-tiled axis, so g_ref[c] is a
        # plain leading-axis slice (no sublane slicing, full vregs on the VPU).
        g0 = g_ref[0].astype(jnp.float32)
        ss = g0 * g0                                      # (TILE_R, 128)
        for c in range(1, C):
            gc = g_ref[c].astype(jnp.float32)
            ss = ss + gc * gc

        # NOTE: forward-only; if this is ever differentiated, use
        # sqrt(ss + eps) to avoid the infinite derivative at 0.
        pen = (jnp.sqrt(ss) - 1.0) ** 2                   # (TILE_R, 128)

        # Lane/sublane-parallel accumulation across spatial tiles; padded
        # positions contribute exactly 1.0 each (subtracted wrapper-side).
        @pl.when(t == 0)
        def _init():
            acc_ref[...] = jnp.zeros_like(acc_ref)

        acc_ref[...] += pen

        # Cross-lane reduce + lane-sparse (1,1) store only once per stream.
        @pl.when(t == num_t - 1)
        def _finalize():
            out_ref[...] = jnp.sum(acc_ref[...], keepdims=True)

    return kernel


def _plan_tiling(HW: int, C: int, itemsize: int, B: int):
    """Pick (tile_r, nsplit, num_t, r_pad) for the (B, C, R, 128) layout."""
    # ~2 MiB per input buffer: double-buffered input + f32 intermediates stay
    # well inside v5e's 16 MiB default scoped-VMEM limit (32 MiB on v6e/v7x);
    # mem-bound kernels plateau at 1-4 MiB blocks, so bigger buys nothing.
    target_bytes = 2 * 1024 * 1024
    max_rows = max(8, (target_bytes // max(1, C * 128 * itemsize)) // 8 * 8)

    r8 = _round_up(pl.cdiv(HW, 128), 8)     # rows of 128 lanes, sublane-aligned
    if r8 <= max_rows:
        return r8, 1, 1, r8                 # whole spatial extent in one tile

    tile_r = max_rows
    # Megacore: if the batch axis alone cannot balance both TensorCores
    # (B == 1 or odd), split the spatial stream into two "parallel" halves.
    nsplit = 2 if (B % 2 == 1) else 1
    num_t_total = _round_up(pl.cdiv(r8, tile_r), nsplit)
    num_t = num_t_total // nsplit
    return tile_r, nsplit, num_t, num_t_total * tile_r


def gradient_penalty_from_grads(gradients: jax.Array) -> jax.Array:
    """gradients: (B, C, H, W) -> scalar penalty; hot path in a Pallas kernel."""
    B, C, H, W = gradients.shape
    HW = H * W
    itemsize = jnp.dtype(gradients.dtype).itemsize

    tile_r, nsplit, num_t, r_pad = _plan_tiling(HW, C, itemsize, B)
    hw_pad = r_pad * 128

    # Lane+sublane-dense layout (B, C, R, 128); keep native dtype, upcast
    # per-channel inside the kernel.
    g = gradients.reshape(B, C, HW)
    if hw_pad != HW:
        g = jnp.pad(g, ((0, 0), (0, 0), (0, hw_pad - HW)))
    g4 = g.reshape(B, C, r_pad, 128)

    partials = pl.pallas_call(
        _make_penalty_kernel(C, num_t),
        out_shape=jax.ShapeDtypeStruct((B, nsplit, 1, 1), jnp.float32),
        grid=(B, nsplit, num_t),
        in_specs=[pl.BlockSpec((None, C, tile_r, 128),
                               lambda b, s, t: (b, 0, s * num_t + t, 0))],
        out_specs=pl.BlockSpec((None, None, 1, 1),
                               lambda b, s, t: (b, s, 0, 0)),
        scratch_shapes=[pltpu.VMEM((tile_r, 128), jnp.float32)],
        compiler_params=pltpu.CompilerParams(
            dimension_semantics=("parallel", "parallel", "arbitrary")),
        # If an xprof trace shows exposed DMA on v7x, add
        # pipeline_mode=pl.Buffered(3) to the input BlockSpec (~2 MiB extra).
    )(g4)

    # Tiny wrapper-side finish: each zero-padded position added exactly
    # (sqrt(0) - 1)^2 = 1 to its batch's partial sum -> subtract the count,
    # then divide by the true element count B*H*W.
    n_pad = hw_pad - HW
    total = jnp.sum(partials) - jnp.float32(B * n_pad)
    return total / jnp.float32(B * HW)


def gradient_penalty(blended_samples: jax.Array, score_fn) -> jax.Array:
    """Equivalent of GradientPenalty.forward.

    torch.autograd.grad(outputs=scores, inputs=samples, grad_outputs=ones) is
    exactly the VJP of score_fn evaluated at ones_like(scores).
    """
    # TODO(synk): torch.autograd.grad over an externally-built graph has no
    # Pallas equivalent; jax.vjp (plain JAX glue) produces `gradients`, the
    # norm/penalty hot path runs in the Pallas kernel.
    scores, vjp_fn = jax.vjp(score_fn, blended_samples)
    gradients = vjp_fn(jnp.ones_like(scores))[0]
    return gradient_penalty_from_grads(gradients)


if __name__ == "__main__":
    key = jax.random.PRNGKey(0)
    k_x, k_w = jax.random.split(key)

    B, C, H, W = 2, 4, 16, 16
    blended_samples = jax.random.normal(k_x, (B, C, H, W), dtype=jnp.float32)

    # Deterministic synthetic discriminator: a single linear scorer.
    w = jax.random.normal(k_w, (C * H * W,), dtype=jnp.float32) * 0.05

    def score_fn(x):
        return x.reshape(x.shape[0], -1) @ w          # (B,) blended_scores

    penalty = jax.block_until_ready(gradient_penalty(blended_samples, score_fn))

    # Pure-JAX reference check.
    scores, vjp_fn = jax.vjp(score_fn, blended_samples)
    g = vjp_fn(jnp.ones_like(scores))[0]
    ref = jnp.mean((jnp.linalg.norm(g, ord=2, axis=1) - 1.0) ** 2)
    assert jnp.allclose(penalty, ref, rtol=1e-5, atol=1e-5), (penalty, ref)

    print("KERNEL_OK")
</pallas_src>

<mosaic_0001>
module attributes {stable_mosaic.version = 11 : i64} {
  func.func @kernel(%arg0: i32, %arg1: i32, %arg2: i32, %arg3: memref<1x4x8x128xf32, #tpu.memory_space<vmem>>, %arg4: memref<1x1x1x1xf32, #tpu.memory_space<vmem>>, %arg5: memref<8x128xf32, #tpu.memory_space<vmem>>) attributes {dimension_semantics = [#tpu.dimension_semantics<parallel>, #tpu.dimension_semantics<parallel>, #tpu.dimension_semantics<arbitrary>], iteration_bounds = array<i64: 2, 1, 1>, scalar_prefetch = 0 : i64, scratch_operands = 1 : i64, tpu.core_type = #tpu.core_type<tc>, window_params = [{transform_indices = @transform_0, window_bounds = array<i64: 1, 4, 8, 128>}, {transform_indices = @transform_1, window_bounds = array<i64: 1, 1, 1, 1>}]} {
    %c0 = arith.constant 0 : index
    %c0_0 = arith.constant 0 : index
    %c0_1 = arith.constant 0 : index
    %c0_2 = arith.constant 0 : index
    %0 = vector.load %arg3[%c0, %c0_0, %c0_1, %c0_2] : memref<1x4x8x128xf32, #tpu.memory_space<vmem>>, vector<1x1x8x128xf32>
    %1 = vector.shape_cast %0 : vector<1x1x8x128xf32> to vector<8x128xf32>
    %2 = arith.mulf %1, %1 : vector<8x128xf32>
    %c0_3 = arith.constant 0 : index
    %c1 = arith.constant 1 : index
    %c0_4 = arith.constant 0 : index
    %c0_5 = arith.constant 0 : index
    %3 = vector.load %arg3[%c0_3, %c1, %c0_4, %c0_5] : memref<1x4x8x128xf32, #tpu.memory_space<vmem>>, vector<1x1x8x128xf32>
    %4 = vector.shape_cast %3 : vector<1x1x8x128xf32> to vector<8x128xf32>
    %5 = arith.mulf %4, %4 : vector<8x128xf32>
    %6 = arith.addf %2, %5 : vector<8x128xf32>
    %c0_6 = arith.constant 0 : index
    %c2 = arith.constant 2 : index
    %c0_7 = arith.constant 0 : index
    %c0_8 = arith.constant 0 : index
    %7 = vector.load %arg3[%c0_6, %c2, %c0_7, %c0_8] : memref<1x4x8x128xf32, #tpu.memory_space<vmem>>, vector<1x1x8x128xf32>
    %8 = vector.shape_cast %7 : vector<1x1x8x128xf32> to vector<8x128xf32>
    %9 = arith.mulf %8, %8 : vector<8x128xf32>
    %10 = arith.addf %6, %9 : vector<8x128xf32>
    %c0_9 = arith.constant 0 : index
    %c3 = arith.constant 3 : index
    %c0_10 = arith.constant 0 : index
    %c0_11 = arith.constant 0 : index
    %11 = vector.load %arg3[%c0_9, %c3, %c0_10, %c0_11] : memref<1x4x8x128xf32, #tpu.memory_space<vmem>>, vector<1x1x8x128xf32>
    %12 = vector.shape_cast %11 : vector<1x1x8x128xf32> to vector<8x128xf32>
    %13 = arith.mulf %12, %12 : vector<8x128xf32>
    %14 = arith.addf %10, %13 : vector<8x128xf32>
    %15 = math.sqrt %14 : vector<8x128xf32>
    %cst = arith.constant 1.000000e+00 : f32
    %16 = vector.broadcast %cst : f32 to vector<8x128xf32>
    %17 = arith.subf %15, %16 : vector<8x128xf32>
    %18 = arith.mulf %17, %17 : vector<8x128xf32>
    %c0_i32 = arith.constant 0 : i32
    %19 = arith.cmpi eq, %arg2, %c0_i32 : i32
    %20 = arith.extui %19 : i1 to i32
    %c0_i32_12 = arith.constant 0 : i32
    %21 = arith.cmpi ne, %20, %c0_i32_12 : i32
    scf.if %21 {
      %cst_19 = arith.constant 0.000000e+00 : f32
      %28 = vector.broadcast %cst_19 : f32 to vector<8x128xf32>
      %c0_20 = arith.constant 0 : index
      %c0_21 = arith.constant 0 : index
      %29 = vector.load %arg5[%c0_20, %c0_21] : memref<8x128xf32, #tpu.memory_space<vmem>>, vector<8x128xf32>
      tpu.vector_store %arg5[%c0_20, %c0_21], %28 {strides = array<i32>} : memref<8x128xf32, #tpu.memory_space<vmem>>, vector<8x128xf32>,
    } else {
    }
    %c0_13 = arith.constant 0 : index
    %c0_14 = arith.constant 0 : index
    %22 = vector.load %arg5[%c0_13, %c0_14] : memref<8x128xf32, #tpu.memory_space<vmem>>, vector<8x128xf32>
    %23 = arith.addf %22, %18 : vector<8x128xf32>
    %c0_15 = arith.constant 0 : index
    %c0_16 = arith.constant 0 : index
    %24 = vector.load %arg5[%c0_15, %c0_16] : memref<8x128xf32, #tpu.memory_space<vmem>>, vector<8x128xf32>
    tpu.vector_store %arg5[%c0_15, %c0_16], %23 {strides = array<i32>} : memref<8x128xf32, #tpu.memory_space<vmem>>, vector<8x128xf32>,
    %c0_i32_17 = arith.constant 0 : i32
    %25 = arith.cmpi eq, %arg2, %c0_i32_17 : i32
    %26 = arith.extui %25 : i1 to i32
    %c0_i32_18 = arith.constant 0 : i32
    %27 = arith.cmpi ne, %26, %c0_i32_18 : i32
    scf.if %27 {
      %c0_19 = arith.constant 0 : index
      %c0_20 = arith.constant 0 : index
      %28 = vector.load %arg5[%c0_19, %c0_20] : memref<8x128xf32, #tpu.memory_space<vmem>>, vector<8x128xf32>
      %29 = vector.shape_cast %28 : vector<8x128xf32> to vector<1x8x128xf32>
      %cst_21 = arith.constant dense<0.000000e+00> : vector<1xf32>
      %30 = vector.multi_reduction <add>, %29, %cst_21 [1, 2] : vector<1x8x128xf32> to vector<1xf32>
      %31 = vector.shape_cast %30 : vector<1xf32> to vector<1x1x1xf32>
      %32 = vector.extract %31[0, 0, 0] : f32 from vector<1x1x1xf32>
      %33 = vector.broadcast %32 : f32 to vector<1x1xf32>
      %c0_22 = arith.constant 0 : index
      %c0_23 = arith.constant 0 : index
      %c0_24 = arith.constant 0 : index
      %c0_25 = arith.constant 0 : index
      %34 = vector.load %arg4[%c0_22, %c0_23, %c0_24, %c0_25] : memref<1x1x1x1xf32, #tpu.memory_space<vmem>>, vector<1x1x1x1xf32>
      %35 = vector.shape_cast %34 : vector<1x1x1x1xf32> to vector<1x1xf32>
      %36 = vector.shape_cast %33 : vector<1x1xf32> to vector<1x1x1x1xf32>
      tpu.vector_store %arg4[%c0_22, %c0_23, %c0_24, %c0_25], %36 {strides = array<i32>} : memref<1x1x1x1xf32, #tpu.memory_space<vmem>>, vector<1x1x1x1xf32>,
    } else {
    }
    return
  }
  func.func @transform_0(%arg0: i32, %arg1: i32, %arg2: i32) -> (i32, i32, i32, i32) {
    %c1_i32 = arith.constant 1 : i32
    %0 = arith.muli %arg1, %c1_i32 : i32
    %1 = arith.addi %0, %arg2 : i32
    %c0_i32 = arith.constant 0 : i32
    %c0_i32_0 = arith.constant 0 : i32
    %c0_i32_1 = arith.constant 0 : i32
    return %arg0, %c0_i32, %1, %c0_i32_0 : i32, i32, i32, i32
  }
  func.func @transform_1(%arg0: i32, %arg1: i32, %arg2: i32) -> (i32, i32, i32, i32) {
    %c0_i32 = arith.constant 0 : i32
    %c0_i32_0 = arith.constant 0 : i32
    %c0_i32_1 = arith.constant 0 : i32
    return %arg0, %arg1, %c0_i32, %c0_i32_0 : i32, i32, i32, i32
  }
}

</mosaic_0001>

<bundles_post_ra>
// kernel: tpu_custom_call.1
= control target key start
LH: loop header
LB: loop body
LE: loop exit
PB: predicated region body
PF: predicated region fallthrough
CT: control target
= control target key end

     0   :  { %6 = vsyncpa [#allocation4], 0  ;;  %s563_s0 = inlined_call_operand.hbm [shape: f32[2,4,8,128], index: 0, kind: input, shape index: {}]   ;;  %s564_s1 = inlined_call_operand.vmem [shape: f32[2,1,1,1], index: 1, kind: output, shape index: {}]  }
   0x1   :  { %8 = vsyncpa [#allocation4 + $0x1], 0  ;;  %s475_s6 = smov 0   ;;  %s477_s7 = smov 0  }
   0x2   :  { %s479_s8 = smov 0   ;;  %s481_s9 = smov 0  }
   0x3   :  { %s483_s10 = smov 0   ;;  %s485_s11 = smov 0  }
   0x4 LB: > { %s304_s12 = sadd.s32 4294967295, %s461_s11   ;;  %s33_s13 = sadd.s32 1, %s457_s10  ;;  %s461_s11 = sphi %s485_s11, %s14_s11   ;;  %s457_s10 = sphi %s483_s10, %s571_s10   ;;  %s453_s9 = sphi %s481_s9, %s570_s9   ;;  %s449_s8 = sphi %s479_s8, %s569_s8   ;;  %s445_s7 = sphi %s477_s7, %s568_s7   ;;  %s441_s6 = sphi %s475_s6, %s567_s6  }
   0x5   : > { %p35_p0 = scmp.ge.s32.totalorder %s33_s13, 2  ;;  %s44_s14 = sadd.s32 1, %s449_s8 }
   0x6   : > { %p51_p1 = scmp.ne.s32.totalorder %s449_s8, %s445_s7  ;;  %p52_p2 = scmp.eq.s32.totalorder %s461_s11, 0 }
   0x7   : > { %s573_s13 = smov (%p35_p0, %s33_s13), 0  ;;  %p57_p4 = scmp.ne.s32.totalorder %s445_s7, %s441_s6 }
   0x8   : > { %p511_p3 = por %p52_p2, %p51_p1  ;;  %s39_s16 = ssub.s32 %s457_s10, %s573_s13 }
   0x9   : > { %p58_p5 = scmp.eq.s32.totalorder %s304_s12, 0  ;;  %p42_p6 = scmp.eq.s32.totalorder %s39_s16, 0 }
   0xa   : > { %p328_p8 = scmp.lt.s32.totalorder %s461_s11, 2  ;;  %s109_s19 = sand.u32 1, %s449_s8  }
   0xb   : > { %p518_p7 = por %p58_p5, %p57_p4  ;;  %s319_s20 = sshll.u32 %s457_s10, 5 }
   0xc   : > { %s524_s18 = scalar_select %p42_p6, %s449_s8, %s44_s14  }
   0xd   : > { %s308_s21 = sshll.u32 %s109_s19, 5  ;;  %s120_s24 = scalar_lea.hbm %s563_s0, %s319_s20 }
   0xe   : > { %s121_s25 = sshll.u32 %s120_s24, 4  ;;  %s113_s26 = scalar_lea.vmem [#allocation3], %s308_s21  ;;  %s122_s25 = int_to_ptr.hbm [resolvable:$true] %s121_s25 }
   0xf   : > { %s123_s27 = sshll.u32 %s113_s26, 4  ;;  %p325_p9 = pnand %p328_p8, %p511_p3  ;;  %s124_s27 = int_to_ptr.vmem [resolvable:$true] %s123_s27 }
  0x10   : > { %p311_p10 = scmp.ge.s32.totalorder %s461_s11, 1  ;;  %p131_p11 = scmp.lt.s32.totalorder %s461_s11, 3 }
  0x11   : > { %s110_s28 = scalar_lea.sflag [#allocation4], %s109_s19  ;;  %s463_s29 = smov 128  }
  0x12   : > { %s464_s30 = smov 8   ;;  %p132_p12 = pnand %p311_p10, %p131_p11 }
  0x13   : > { %327 = dma.hbm_to_vmem [thread:$0]  (!%p325_p9), %s122_s25, 512, %s124_s27, %s110_s28, %s463_s29, %s463_s29, %s464_s30  }
  0x14   : > { %135 = sbr.rel (%p132_p12) target bundleno = 240 (0xf0), region = 24  ;;  %s137_s2 = sand.u32 (!%p132_p12), 1, %s445_s7  }
  0x15   : > { %s312_s3 = sshll.u32 (!%p132_p12), %s137_s2, 5  ;;  %s138_s4 = scalar_lea.sflag (!%p132_p12), [#allocation4], %s137_s2 }
  0x16   : > { %s141_s5 = scalar_lea.vmem (!%p132_p12), [#allocation3], %s312_s3 }
  0x19   : > { %436 = dma.done.wait (%p518_p7), %s138_s4, 512  }
  0x1a   : > { %438 = vsyncadd (%p518_p7), %s138_s4, 4294966784  ;;  %v169_v0 = vld [vmem:[%s141_s5] sm:$0xff]  ;;  %v313_v1 = vld [vmem:[%s141_s5 + $0x8] sm:$0xff]  ;;  %p163_p13 = scmp.lt.s32.totalorder %s453_s9, 1  ;;  %vm219_vm2 = vcmask 0  }
  0x1b   : > { %v314_v2 = vld [vmem:[%s141_s5 + $0x10] sm:$0xff]  ;;  %v170_v3 = vmul.f32 %v169_v0, %v169_v0  ;;  %v173_v4 = vmul.f32 %v313_v1, %v313_v1  ;;  %v315_v6 = vld [vmem:[%s141_s5 + $0x18] sm:$0xff] }
  0x1c   : > { %v177_v5 = vmul.f32 %v314_v2, %v314_v2  ;;  %v181_v8 = vmul.f32 %v315_v6, %v315_v6  ;;  %s575_s9 = smov (!%p163_p13, %s453_s9), 1 }
  0x1d   : > { %v174_v7 = vadd.f32 %v173_v4, %v170_v3  ;;  %s168_s14 = scalar_lea.vmem %s564_s1, %s575_s9 }
  0x1f   : > { %v178_v9 = vadd.f32 %v177_v5, %v174_v7 }
  0x21   : > { %v182_v10 = vadd.f32 %v181_v8, %v178_v9 }
  0x23   : > { %379 = vrsqrt.f32 %v182_v10  ;;  %vm190_vm0 = vcmp.eq.f32.partialorder %v182_v10, inf  ;;  %v193_v17 = vand.u32 2147483648, %v182_v10  ;;  %vm192_vm1 = vcmp.eq.f32.partialorder %v182_v10, 0.0 }
  0x29   : > { %v380_v11 = vpop.eup %379 }
  0x2a   : > { %v184_v12 = vmul.f32 %v380_v11, %v182_v10 }
  0x2c   : > { %v185_v13 = vmul.f32 %v380_v11, %v184_v12 }
  0x2e   : > { %v186_v14 = vmul.f32 0.5, %v185_v13 }
  0x30   : > { %v187_v15 = vsub.f32 1.5, %v186_v14 }
  0x32   : > { %v188_v16 = vmul.f32 %v380_v11, %v187_v15 }
  0x34   : > { %v189_v18 = vmul.f32 %v188_v16, %v182_v10 }
  0x36   : > { %v191_v19 = vsel %vm190_vm0, %v182_v10, %v189_v18 }
  0x37   : > { %v194_v20 = vsel %vm192_vm1, %v193_v17, %v191_v19 }
  0x38   : > { %v316_v21 = vadd.f32 -1.0, %v194_v20 }
  0x3a   : > { %v196_v22 = vmul.f32 %v316_v21, %v316_v21 }
  0x3c   : > { %209 = vadd.xlane.f32.xlu0 %v196_v22 }
  0xaf   : > { %v210_v23 = vpop.xlane.xlu0 %209 }
  0xb0   : > { %v211_v24 = vrot.slane %v210_v23, 4 }
  0xb2   : > { %v212_v25 = vadd.f32 %v211_v24, %v210_v23 }
  0xb4   : > { %v213_v26 = vrot.slane %v212_v25, 2 }
  0xb6   : > { %v214_v27 = vadd.f32 %v213_v26, %v212_v25 }
  0xb8   : > { %v215_v28 = vrot.slane %v214_v27, 1 }
  0xba   : > { %v216_v29 = vadd.f32 %v215_v28, %v214_v27 }
  0xbc   : > { %320 = vpush %v216_v29 }
  0xed   : > { %s321_s15 = spop %320 }
  0xee   : > { %v218_v30 = vstv %s321_s15 }
  0xef   : > { %220 = vst.msk [vmem:[%s168_s14] sm:$0x1] %vm219_vm2, %v218_v30 }
  0xf0 PF: > { %s14_s11 = sadd.s32 1, %s461_s11   ;;  %s567_s6 = smov %s445_s7 }
  0xf1   : > { %p11_p0 = scmp.ge.s32.totalorder %s14_s11, 4   ;;  %s568_s7 = smov %s449_s8 }
  0xf2   : > { %s569_s8 = smov %s524_s18  ;;  %s570_s9 = smov %s457_s10 }
  0xf3   : > { %s571_s10 = smov %s573_s13  ;;  %13 = sbr.rel (!%p11_p0) target bundleno = 4 (0x4), region = 75 }
  0xf8   :  { %244 = vsyncpa [#allocation4], 1 }
  0xf9   :  { %246 = vsyncpa [#allocation4 + $0x1], 1 }

</bundles_post_ra>
